<compile_context>
chip_gen: v7x
topology: tpu7x:2x2x1
jax: 0.10.0
libtpu: 0.0.40
codegen_flags: <defaults>
</compile_context>

<pallas_src>
import functools

import jax
import jax.numpy as jnp
from jax.experimental import pallas as pl
from jax.experimental.pallas import tpu as pltpu


_MIB = 1024 * 1024
_DEFAULT_VMEM_CAP = 64 * _MIB        # v7x per-TC physical VMEM; conservative fallback
_MIN_PALLAS_BYTES = 512 * 1024       # below this, plain JAX: kernel launch would dominate
_MIN_GRID_STEPS = 4                  # keep DMA/compute overlapped, feed both v7x TCs


def _vmem_capacity_bytes():
    try:
        return int(pltpu.get_tpu_info().vmem_capacity_bytes)
    except Exception:
        return _DEFAULT_VMEM_CAP


def _sublane_align(dtype) -> int:
    # Packed sub-32-bit dtypes need 16 (bf16) / 32 (int8) sublane alignment.
    return max(8, 32 // jnp.dtype(dtype).itemsize)


def _round_up(n, m):
    return -(-n // m) * m


def _block_budget(n_arrays):
    """Per-block byte budget + explicit scoped-VMEM limit, generation aware."""
    cap = _vmem_capacity_bytes()
    vmem_limit = min(cap // 2, 64 * _MIB)        # never ask for more than half of physical
    per_block = (vmem_limit - 4 * _MIB) // (2 * n_arrays)   # double-buffered per array
    per_block = max(min(per_block, 4 * _MIB), 512 * 1024)
    return per_block, int(vmem_limit)


def _pick_lane_width(n_elem):
    """Widest lane width (multiple of 128) dividing n_elem exactly, else None."""
    for cand in (4096, 2048, 1024, 512, 256, 128):
        if n_elem % cand == 0:
            return cand
    return None


def _as_2d(a):
    """Collapse to 2D (leading dims merged) -- contiguous reshape, no data movement."""
    if a.ndim == 0:
        return a.reshape(1, 1)
    if a.ndim == 1:
        return a.reshape(1, a.shape[0])
    lead = 1
    for d in a.shape[:-1]:
        lead *= d
    return a.reshape(lead, a.shape[-1])


def _tiles_2d(rows, cols, itemsize, sub, block_bytes):
    """Pick (tile_r, tile_c) for a (rows, cols) slab -- no padding ever required."""
    if cols * itemsize <= block_bytes:
        tile_c = cols                               # full last dim: legal even if not %128
    else:
        tile_c = max(128, (block_bytes // (sub * itemsize)) // 128 * 128)
        tile_c = min(tile_c, _round_up(cols, 128))  # ragged last col-block is masked
    tile_r = max(sub, (block_bytes // (tile_c * itemsize)) // sub * sub)
    # Force >= _MIN_GRID_STEPS row steps on big inputs so the pipeline actually pipelines.
    want_r = max(_round_up(pl.cdiv(rows, _MIN_GRID_STEPS), sub), sub)
    tile_r = min(tile_r, want_r)
    tile_r = min(tile_r, _round_up(rows, sub))
    if tile_r >= rows:
        tile_r = rows                               # full dim block: no divisibility needed
    return tile_r, tile_c


# -----------------------------------------------------------------------------
# General path: y = sub_layer(x) materialized in JAX; residual add in Pallas.
# -----------------------------------------------------------------------------
def _residual_add_kernel(x_ref, y_ref, o_ref):
    # Add in the promoted dtype (jnp promotion inside the kernel), cast once on store.
    o_ref[...] = (x_ref[...] + y_ref[...]).astype(o_ref.dtype)


def _residual_add(x, y, *, alias_y=True):
    """Elementwise x + y over arbitrary shapes via a lane-dense tiled Pallas kernel."""
    out_dtype = jnp.result_type(x.dtype, y.dtype)
    orig_shape = x.shape
    n = x.size

    lanes = _pick_lane_width(n)
    if lanes is not None:
        x2d = x.reshape(n // lanes, lanes)          # lane-dense repack, no padding
        y2d = y.reshape(n // lanes, lanes)
    else:
        x2d, y2d = _as_2d(x), _as_2d(y)             # natural 2D collapse, no padding
    rows, cols = x2d.shape

    itemsize = max(jnp.dtype(d).itemsize for d in (x.dtype, y.dtype, out_dtype))
    sub = max(_sublane_align(x.dtype), _sublane_align(y.dtype), _sublane_align(out_dtype))
    block_bytes, vmem_limit = _block_budget(n_arrays=3)
    tile_r, tile_c = _tiles_2d(rows, cols, itemsize, sub, block_bytes)
    grid = (pl.cdiv(rows, tile_r), pl.cdiv(cols, tile_c))

    extra = {}
    if alias_y and (y is not x) and y.dtype == out_dtype:
        # y is a freshly-created temp (dead after the add): always safe to reuse its buffer.
        extra["input_output_aliases"] = {1: 0}

    cost = pl.CostEstimate(flops=int(n), transcendentals=0,
                           bytes_accessed=int(3 * n * itemsize))

    out2d = pl.pallas_call(
        _residual_add_kernel,
        out_shape=jax.ShapeDtypeStruct((rows, cols), out_dtype),
        grid_spec=pltpu.PrefetchScalarGridSpec(
            num_scalar_prefetch=0,
            grid=grid,
            in_specs=[pl.BlockSpec((tile_r, tile_c), lambda i, j: (i, j)),
                      pl.BlockSpec((tile_r, tile_c), lambda i, j: (i, j))],
            out_specs=pl.BlockSpec((tile_r, tile_c), lambda i, j: (i, j)),
        ),
        compiler_params=pltpu.CompilerParams(
            dimension_semantics=("parallel", "parallel"),
            vmem_limit_bytes=vmem_limit),
        cost_estimate=cost,
        **extra,
    )(x2d, y2d)

    return out2d.reshape(orig_shape)


def identity_residual_layer(x, sub_layer, *args, min_pallas_bytes=_MIN_PALLAS_BYTES,
                            alias_y=True, **kwargs):
    """JAX/Pallas equivalent of IdentityResidualLayer.forward: x + sub_layer(x, ...).

    The (arbitrary) sub_layer is evaluated in plain JAX; only the residual add runs in
    Pallas.  Prefer identity_residual_layer_fused() for elementwise / per-channel
    sub_layers -- it avoids materializing y in HBM (~2N instead of ~5N traffic).
    """
    y = sub_layer(x, *args, **kwargs)
    assert y.shape == x.shape, "sub_layer must preserve shape for the residual add"
    out_dtype = jnp.result_type(x.dtype, y.dtype)
    if x.size * jnp.dtype(out_dtype).itemsize < min_pallas_bytes:
        return x + y            # small-input fast path: XLA fuses this optimally
    return _residual_add(x, y, alias_y=alias_y)


# -----------------------------------------------------------------------------
# Fused path: the (elementwise, per-channel) sub_layer computed inside the kernel.
# -----------------------------------------------------------------------------
def _fused_residual_kernel(tile_fn, x_ref, *rest):
    *param_refs, o_ref = rest
    xv = x_ref[...].astype(o_ref.dtype)
    yv = tile_fn(xv, *[p[...] for p in param_refs])
    o_ref[...] = (xv + yv).astype(o_ref.dtype)


def _normalize_channel_param(p, N, C, ndim, dtype):
    """Validate/reshape a per-(batch,channel) parameter to a (N*C, 1) row vector."""
    p = jnp.asarray(p)
    if p.ndim == 0:
        p2 = jnp.broadcast_to(p, (N, C))
    elif p.ndim == 1:
        if p.shape[0] not in (1, C):
            raise ValueError(f"1-D channel param must have length 1 or C={C}, got {p.shape}")
        p2 = jnp.broadcast_to(p.reshape(1, p.shape[0]), (N, C))
    else:
        if p.ndim != ndim or any(d != 1 for d in p.shape[2:]):
            raise ValueError(f"channel param must broadcast as (N|1, C|1, 1,...): {p.shape}")
        if p.shape[0] not in (1, N) or p.shape[1] not in (1, C):
            raise ValueError(f"channel param batch/channel dims must be 1/{N} and 1/{C}: {p.shape}")
        p2 = jnp.broadcast_to(p.reshape(p.shape[0], p.shape[1]), (N, C))
    return p2.reshape(N * C, 1).astype(dtype)


def identity_residual_layer_fused(x, tile_fn, *channel_params,
                                  min_pallas_bytes=_MIN_PALLAS_BYTES):
    """Residual layer with the sub_layer FUSED into the Pallas kernel.

    For sub_layers  y = tile_fn(x, *params)  that are elementwise over x with params
    broadcasting per (batch, channel) of an (N, C, *spatial) input, y never touches HBM:
    the kernel reads x and writes x + tile_fn(x) directly (~2N HBM traffic).
    """
    params = [jnp.asarray(p) for p in channel_params]
    out_dtype = jnp.result_type(x.dtype, *[p.dtype for p in params]) if params else x.dtype

    if x.ndim < 3 or x.size * jnp.dtype(out_dtype).itemsize < min_pallas_bytes:
        # TODO(synk): 0/1/2-D inputs take the plain (XLA-fused) expression.
        return (x + tile_fn(x, *channel_params)).astype(out_dtype)

    orig_shape = x.shape
    N, C = x.shape[0], x.shape[1]
    spatial = 1
    for d in x.shape[2:]:
        spatial *= d
    rows, cols = N * C, spatial

    row_params = [_normalize_channel_param(p, N, C, x.ndim, out_dtype) for p in params]
    x2d = x.reshape(rows, cols)                    # contiguous view-merge, no data movement

    itemsize = max(jnp.dtype(x.dtype).itemsize, jnp.dtype(out_dtype).itemsize)
    sub = max(_sublane_align(x.dtype), _sublane_align(out_dtype))
    block_bytes, vmem_limit = _block_budget(n_arrays=2)      # param blocks are negligible
    tile_r, tile_c = _tiles_2d(rows, cols, itemsize, sub, block_bytes)
    grid = (pl.cdiv(rows, tile_r), pl.cdiv(cols, tile_c))     # ragged blocks are masked

    x_spec = pl.BlockSpec((tile_r, tile_c), lambda i, j: (i, j))
    p_spec = pl.BlockSpec((tile_r, 1), lambda i, j: (i, 0))

    n = rows * cols
    cost = pl.CostEstimate(flops=int(2 * n), transcendentals=int(n),
                           bytes_accessed=int(2 * n * itemsize))

    out2d = pl.pallas_call(
        functools.partial(_fused_residual_kernel, tile_fn),
        out_shape=jax.ShapeDtypeStruct((rows, cols), out_dtype),
        grid_spec=pltpu.PrefetchScalarGridSpec(
            num_scalar_prefetch=0,
            grid=grid,
            in_specs=[x_spec] + [p_spec] * len(row_params),
            out_specs=pl.BlockSpec((tile_r, tile_c), lambda i, j: (i, j)),
        ),
        compiler_params=pltpu.CompilerParams(
            dimension_semantics=("parallel", "parallel"),
            vmem_limit_bytes=vmem_limit),
        cost_estimate=cost,
    )(x2d, *row_params)

    return out2d.reshape(orig_shape)


if __name__ == "__main__":
    key = jax.random.PRNGKey(0)
    k_x, k_w = jax.random.split(key)

    # NCHW input, small shapes: batch=2, channels=4, spatial=16x16
    x = jax.random.normal(k_x, (2, 4, 16, 16), dtype=jnp.float32)

    # Deterministic parameter-free-module-style sub_layer (per-channel scaled tanh).
    scale = jax.random.normal(k_w, (1, 4, 1, 1), dtype=jnp.float32)

    def sub_layer(inp):
        return jnp.tanh(inp) * scale

    # --- Fused path: sub_layer computed inside the Pallas kernel (y never hits HBM) ---
    def tile_fn(x_tile, s_tile):
        return jnp.tanh(x_tile) * s_tile

    out_fused = identity_residual_layer_fused(x, tile_fn, scale, min_pallas_bytes=0)
    out_fused = jax.block_until_ready(out_fused)

    # --- General path: arbitrary sub_layer in JAX, residual add in Pallas -------------
    # (min_pallas_bytes=0 forces the Pallas kernel even at this tiny demo size.)
    out_general = identity_residual_layer(x, sub_layer, min_pallas_bytes=0)
    out_general = jax.block_until_ready(out_general)

    # Reference check (same semantics as PyTorch: x + sub_layer(x))
    ref = x + sub_layer(x)
    assert out_fused.shape == x.shape and out_fused.dtype == x.dtype
    assert out_general.shape == x.shape and out_general.dtype == x.dtype
    assert jnp.allclose(out_fused, ref, atol=2e-5, rtol=2e-5)
    assert jnp.allclose(out_general, ref, atol=1e-6, rtol=1e-6)

    print("KERNEL_OK")
</pallas_src>

<mosaic_0001>
module attributes {stable_mosaic.version = 11 : i64} {
  func.func @_fused_residual_kernel(%arg0: i32, %arg1: i32, %arg2: memref<8x256xf32, #tpu.memory_space<vmem>>, %arg3: memref<8x1xf32, #tpu.memory_space<vmem>>, %arg4: memref<8x256xf32, #tpu.memory_space<vmem>>) attributes {dimension_semantics = [#tpu.dimension_semantics<parallel>, #tpu.dimension_semantics<parallel>], iteration_bounds = array<i64: 1, 1>, scalar_prefetch = 0 : i64, scratch_operands = 0 : i64, tpu.core_type = #tpu.core_type<tc>, window_params = [{transform_indices = @transform_0, window_bounds = array<i64: 8, 256>}, {transform_indices = @transform_1, window_bounds = array<i64: 8, 1>}, {transform_indices = @transform_2, window_bounds = array<i64: 8, 256>}]} {
    %c0 = arith.constant 0 : index
    %c0_0 = arith.constant 0 : index
    %0 = vector.load %arg2[%c0, %c0_0] : memref<8x256xf32, #tpu.memory_space<vmem>>, vector<8x256xf32>
    %c0_1 = arith.constant 0 : index
    %c0_2 = arith.constant 0 : index
    %1 = vector.load %arg3[%c0_1, %c0_2] : memref<8x1xf32, #tpu.memory_space<vmem>>, vector<8x1xf32>
    %2 = math.tanh %0 : vector<8x256xf32>
    %3 = vector.broadcast %1 : vector<8x1xf32> to vector<8x256xf32>
    %4 = arith.mulf %2, %3 : vector<8x256xf32>
    %5 = arith.addf %0, %4 : vector<8x256xf32>
    %c0_3 = arith.constant 0 : index
    %c0_4 = arith.constant 0 : index
    %6 = vector.load %arg4[%c0_3, %c0_4] : memref<8x256xf32, #tpu.memory_space<vmem>>, vector<8x256xf32>
    tpu.vector_store %arg4[%c0_3, %c0_4], %5 {strides = array<i32>} : memref<8x256xf32, #tpu.memory_space<vmem>>, vector<8x256xf32>,
    return
  }
  func.func @transform_0(%arg0: i32, %arg1: i32) -> (i32, i32) {
    %c0_i32 = arith.constant 0 : i32
    return %arg0, %arg1 : i32, i32
  }
  func.func @transform_1(%arg0: i32, %arg1: i32) -> (i32, i32) {
    %c0_i32 = arith.constant 0 : i32
    %c0_i32_0 = arith.constant 0 : i32
    return %arg0, %c0_i32 : i32, i32
  }
  func.func @transform_2(%arg0: i32, %arg1: i32) -> (i32, i32) {
    %c0_i32 = arith.constant 0 : i32
    return %arg0, %arg1 : i32, i32
  }
}

</mosaic_0001>

<bundles_post_ra>
// kernel: tpu_custom_call.1
= control target key start
LH: loop header
LB: loop body
LE: loop exit
PB: predicated region body
PF: predicated region fallthrough
CT: control target
= control target key end

     0   :  { %7 = vsyncpa [#allocation3], 0  ;;  %s156_s0 = inlined_call_operand.hbm [shape: f32[8,256], index: 0, kind: input, shape index: {}]   ;;  %s157_s1 = inlined_call_operand.vmem [shape: f32[8,1], index: 1, kind: input, shape index: {}]   ;;  %s158_s2 = inlined_call_operand.hbm [shape: f32[8,256], index: 2, kind: output, shape index: {}]  }
   0x1   :  { %8 = vsyncpa [#allocation4], 0  ;;  %s111_s9 = smov [#allocation2]   ;;  %s63_s13 = scalar_lea.hbm %s156_s0, 256 }
   0x2   :  { %s15_s10 = sshll.u32 %s111_s9, 4  ;;  %p64_p0 = scmp.ne.s32.totalorder %s156_s0, %s63_s13  ;;  %s16_s10 = int_to_ptr.vmem [resolvable:$true] %s15_s10 }
   0x3   :  { %p67_p1 = scmp.lt.u32.totalorder %s63_s13, %s156_s0 }
   0x5   :  { %p69_p2 = pnand %p67_p1, %p64_p0 }
   0x7   :  { %72 = shalt.err (!%p69_p2)
}
   0x8   :  { %s73_s18 = scalar_lea.vmem %s16_s10, 256  ;;  %p78_p4 = scmp.lt.s32.totalorder %s16_s10, %s16_s10 }
   0x9   :  { %p74_p3 = scmp.ne.s32.totalorder %s16_s10, %s73_s18  ;;  %p79_p5 = scmp.lt.s32.totalorder %s73_s18, %s73_s18 }
   0xb   :  { %p80_p6 = por %p79_p5, %p78_p4 }
   0xd   :  { %p81_p7 = pnand %p80_p6, %p74_p3 }
   0xf   :  { %84 = shalt.err (!%p81_p7)
}
  0x10   :  { %18 = dma.hbm_to_vmem [thread:$0]  %s156_s0, 256, %s16_s10, [#allocation3]  }
  0x11   :  { %107 = dma.done.wait [#allocation3], 256  }
  0x12   :  { %108 = vsyncadd [#allocation3], 4294967040  ;;  %v112_v0 = vmov 0   ;;  %v26_v1 = vld [vmem:[%s157_s1] sm:$0xff]  ;;  %v25_v3 = vld [vmem:[#allocation2 + $0x8] sm:$0xff]  ;;  %s113_s23 = smov [#allocation5]  }
  0x13   :  { %58 = vset.pattern.permute.xlu0 %v112_v0  ;;  %v24_v2 = vld [vmem:[#allocation2] sm:$0xff]  ;;  %s46_s24 = sshll.u32 %s113_s23, 4  ;;  %s47_s24 = int_to_ptr.vmem [resolvable:$true] %s46_s24 }
  0x14   :  { %31 = vperm.xlu0 %58, %v26_v1   ;;  %59 = vtanh.f32 %v24_v2  ;;  %s85_s0 = scalar_lea.vmem %s47_s24, 256  ;;  %p90_p9 = scmp.lt.s32.totalorder %s47_s24, %s47_s24 }
  0x15   :  { %61 = vtanh.f32 %v25_v3  ;;  %p86_p8 = scmp.ne.s32.totalorder %s47_s24, %s85_s0  ;;  %p91_p10 = scmp.lt.s32.totalorder %s85_s0, %s85_s0 }
  0x17   :  { %p92_p11 = por %p91_p10, %p90_p9 }
  0x19   :  { %p93_p12 = pnand %p92_p11, %p86_p8 }
  0x1e   :  { %v60_v4 = vpop.eup %59 }
  0x1f   :  { %v62_v5 = vpop.eup %61 }
  0x93   :  { %v32_v6 = vpop.permute.xlu0 %31 }
  0x94   :  { %v34_v7 = vmul.f32 %v60_v4, %v32_v6  ;;  %v35_v8 = vmul.f32 %v62_v5, %v32_v6 }
  0x96   :  { %v36_v9 = vadd.f32 %v34_v7, %v24_v2  ;;  %v37_v10 = vadd.f32 %v35_v8, %v25_v3 }
  0x98   :  { %38 = vst [vmem:[#allocation5] sm:$0xff] %v36_v9  ;;  %39 = vst [vmem:[#allocation5 + $0x8] sm:$0xff] %v37_v10 }
  0x99   :  { %96 = shalt.err (!%p93_p12)
}
  0x9a   :  { %s97_s26 = scalar_lea.hbm %s158_s2, 256 }
  0x9b   :  { %p98_p13 = scmp.ne.s32.totalorder %s158_s2, %s97_s26  ;;  %p101_p0 = scmp.lt.u32.totalorder %s97_s26, %s158_s2 }
  0x9d   :  { %p103_p1 = pnand %p101_p0, %p98_p13 }
  0x9f   :  { %106 = shalt.err (!%p103_p1)
}
  0xa0   :  { %49 = dma.vmem_to_hbm [thread:$0]  %s47_s24, 256, %s158_s2, [#allocation4]  }
  0xa1   :  { %109 = dma.done.wait [#allocation4], 256  }
  0xa2   :  { %110 = vsyncadd [#allocation4], 4294967040 }
  0xa3   :  { %53 = vsyncpa [#allocation3], 1 }
  0xa4   :  { %54 = vsyncpa [#allocation4], 1 }

</bundles_post_ra>
